<compile_context>
chip_gen: v7x
topology: tpu7x:2x2x1
jax: 0.10.0
libtpu: 0.0.40
codegen_flags: <defaults>
</compile_context>

<pallas_src>
import jax
import jax.numpy as jnp
from jax.experimental import pallas as pl
from jax.experimental.pallas import tpu as pltpu

EPS = 1e-5
LANE = 128        # vreg lane width -> feature-dim padding target
MAX_TILE_N = 512  # batch rows per grid step (well under scoped VMEM on v5e/v6e/v7x)


def _rup(n, m):
    return ((n + m - 1) // m) * m


def _pad2(a, rows, cols):
    """Zero-pad a 2-D array up to (rows, cols)."""
    out = jnp.zeros((rows, cols), a.dtype)
    return out.at[: a.shape[0], : a.shape[1]].set(a)


# ----------------------------- fused Pallas kernel ----------------------------

def _make_fused_decoder_kernel(n_rest, compute_dtype):
    """x_tile -> [matmul + bias + ReLU] * L -> final matmul + bias, all VMEM-resident.

    Refs: x (tile, latent), w0 (latent, PAD), wp (n_rest, PAD, PAD),
          b (n_rest+1, 1, PAD), out (tile, PAD).
    """

    def kernel(x_ref, w0_ref, wp_ref, b_ref, o_ref):
        # Stage 0: true-width input against (latent_dim, PAD) BN-folded weight.
        h = jnp.dot(x_ref[...], w0_ref[...], preferred_element_type=jnp.float32)
        h = jnp.maximum(h + b_ref[0], 0.0)
        # Remaining hidden stages + final Linear (packed weights, static unroll).
        for i in range(n_rest):
            h = jnp.dot(h.astype(compute_dtype), wp_ref[i],
                        preferred_element_type=jnp.float32)
            h = h + b_ref[i + 1]
            if i < n_rest - 1:          # final Linear has no ReLU
                h = jnp.maximum(h, 0.0)
        o_ref[...] = h.astype(o_ref.dtype)

    return kernel


# --------------------------- parameter creation --------------------------------

def init_decoder_params(key, input_dim, layer_sizes):
    """Deterministic init mirroring the module __init__ shapes.

    hid_dims = layer_sizes[::-1]; one (Linear, BN) pair per consecutive dim pair,
    plus a final Linear(hid_dims[-1], input_dim). Linear params ~ U(-1/sqrt(fan_in), ...).
    """
    hid_dims = list(layer_sizes[::-1])
    stages = []
    for din, dout in zip(hid_dims[:-1], hid_dims[1:]):
        key, kw, kb = jax.random.split(key, 3)
        bound = 1.0 / float(din) ** 0.5
        w = jax.random.uniform(kw, (din, dout), jnp.float32, -bound, bound)
        b = jax.random.uniform(kb, (1, dout), jnp.float32, -bound, bound)
        stages.append(dict(
            w=w, b=b,
            gamma=jnp.ones((1, dout), jnp.float32),
            beta=jnp.zeros((1, dout), jnp.float32),
            rm=jnp.zeros((1, dout), jnp.float32),
            rv=jnp.ones((1, dout), jnp.float32),
        ))
    din = hid_dims[-1]
    key, kw, kb = jax.random.split(key, 3)
    bound = 1.0 / float(din) ** 0.5
    w_f = jax.random.uniform(kw, (din, input_dim), jnp.float32, -bound, bound)
    b_f = jax.random.uniform(kb, (1, input_dim), jnp.float32, -bound, bound)
    return stages, (w_f, b_f)


# ------------------------------- forward builder --------------------------------

def build_decoder_forward(stages, final, latent_dim, input_dim,
                          param_dtype=jnp.bfloat16):
    """Fold BN into Linears, pack/pad params, return a jitted batch-tiled forward fn."""
    # 1) Fold BatchNorm(eval) into the Linear weights (done ONCE, plain JAX).
    mats = []
    for p in stages:
        scale = p["gamma"] * jax.lax.rsqrt(p["rv"] + EPS)        # (1, Dout)
        w_fold = p["w"] * scale                                  # (Din, Dout)
        b_fold = (p["b"] - p["rm"]) * scale + p["beta"]          # (1, Dout)
        mats.append((w_fold, b_fold))
    mats.append(final)                                           # final Linear (no BN/ReLU)

    n_matmul = len(mats)            # L stages + 1 final
    n_rest = n_matmul - 1

    # 2) Common lane-padded width for all hidden/output features.
    pad = _rup(max([w.shape[1] for w, _ in mats] + [w.shape[0] for w, _ in mats[1:]]),
               LANE)

    # First weight keeps its TRUE input width (latent_dim) so x never gets lane-padded.
    w0_p = _pad2(mats[0][0], latent_dim, pad).astype(param_dtype)          # (latent, pad)
    if n_rest > 0:
        wp = jnp.stack([_pad2(w, pad, pad) for w, _ in mats[1:]]).astype(param_dtype)
    else:  # degenerate (not reachable with valid layer_sizes), keep a dummy slab
        wp = jnp.zeros((1, pad, pad), param_dtype)
    bp = jnp.stack([_pad2(b, 1, pad) for _, b in mats]).astype(jnp.float32)  # (L+1,1,pad)

    kernel = _make_fused_decoder_kernel(n_rest, param_dtype)

    weight_bytes = (w0_p.size * w0_p.dtype.itemsize
                    + wp.size * wp.dtype.itemsize
                    + bp.size * bp.dtype.itemsize)

    @jax.jit
    def forward(x):
        n = x.shape[0]
        # Batch tile: multiple of 16 sublanes (bf16 packing), capped for VMEM residency.
        tile = min(MAX_TILE_N, _rup(n, 16))
        n_pad = _rup(n, tile)
        x_p = jnp.pad(x.astype(param_dtype), ((0, n_pad - n), (0, 0)))
        grid = (n_pad // tile,)

        cost = pl.CostEstimate(
            flops=2 * n_matmul * n_pad * pad * pad,
            transcendentals=0,
            bytes_accessed=(x_p.size * x_p.dtype.itemsize
                            + n_pad * pad * 4
                            + weight_bytes),
        )

        out_p = pl.pallas_call(
            kernel,
            grid=grid,
            in_specs=[
                pl.BlockSpec((tile, latent_dim), lambda i: (i, 0)),        # x tile
                pl.BlockSpec((latent_dim, pad), lambda i: (0, 0)),          # w0 (resident)
                pl.BlockSpec((wp.shape[0], pad, pad), lambda i: (0, 0, 0)),  # packed W
                pl.BlockSpec((n_matmul, 1, pad), lambda i: (0, 0, 0)),       # packed b
            ],
            out_specs=pl.BlockSpec((tile, pad), lambda i: (i, 0)),
            out_shape=jax.ShapeDtypeStruct((n_pad, pad), jnp.float32),
            compiler_params=pltpu.CompilerParams(
                dimension_semantics=("parallel",)),   # megacore-shardable on v7x
            cost_estimate=cost,
        )(x_p, w0_p, wp, bp)
        return out_p[:n, :input_dim]

    return forward


# --------------------------------- reference -------------------------------------

def _reference_forward(x, stages, final):
    """Pure-JAX f32 reference matching the PyTorch module (eval-mode BN)."""
    out = x.astype(jnp.float32)
    for p in stages:
        y = out @ p["w"] + p["b"]
        y = (y - p["rm"]) * (p["gamma"] / jnp.sqrt(p["rv"] + EPS)) + p["beta"]
        out = jnp.maximum(y, 0.0)
    w_f, b_f = final
    return out @ w_f + b_f


# ----------------------------------- main -----------------------------------------

if __name__ == "__main__":
    # Shapes consistent with the module: encoder layer_sizes=[32, 16, 8],
    # so the decoder maps latent dim 8 -> 16 -> 32 -> input_dim 32.
    input_dim = 32
    layer_sizes = [32, 16, 8]
    batch = 8
    latent_dim = layer_sizes[-1]

    key = jax.random.PRNGKey(0)
    key, kx = jax.random.split(key)
    x = jax.random.normal(kx, (batch, latent_dim), dtype=jnp.float32)

    stages, final = init_decoder_params(key, input_dim, layer_sizes)

    forward = build_decoder_forward(stages, final, latent_dim, input_dim,
                                    param_dtype=jnp.bfloat16)
    out = jax.block_until_ready(forward(x))

    ref = _reference_forward(x, stages, final)
    assert out.shape == (batch, input_dim)
    # bf16 weights/activations (f32 accumulation) -> looser tolerance than pure f32.
    assert jnp.allclose(out, ref, atol=2e-2, rtol=2e-2), "mismatch vs reference"

    print("KERNEL_OK")
</pallas_src>

<mosaic_0001>
module attributes {stable_mosaic.version = 11 : i64} {
  func.func @kernel(%arg0: i32, %arg1: memref<16x8xbf16, #tpu.memory_space<vmem>>, %arg2: memref<8x128xbf16, #tpu.memory_space<vmem>>, %arg3: memref<2x128x128xbf16, #tpu.memory_space<vmem>>, %arg4: memref<3x1x128xf32, #tpu.memory_space<vmem>>, %arg5: memref<16x128xf32, #tpu.memory_space<vmem>>) attributes {dimension_semantics = [#tpu.dimension_semantics<parallel>], iteration_bounds = array<i64: 1>, scalar_prefetch = 0 : i64, scratch_operands = 0 : i64, tpu.core_type = #tpu.core_type<tc>, window_params = [{transform_indices = @transform_0, window_bounds = array<i64: 16, 8>}, {pipeline_mode = #tpu.pipeline_mode<synchronous>, transform_indices = @transform_1, window_bounds = array<i64: 8, 128>}, {pipeline_mode = #tpu.pipeline_mode<synchronous>, transform_indices = @transform_2, window_bounds = array<i64: 2, 128, 128>}, {pipeline_mode = #tpu.pipeline_mode<synchronous>, transform_indices = @transform_3, window_bounds = array<i64: 3, 1, 128>}, {transform_indices = @transform_4, window_bounds = array<i64: 16, 128>}]} {
    %c0 = arith.constant 0 : index
    %c0_0 = arith.constant 0 : index
    %0 = vector.load %arg1[%c0, %c0_0] : memref<16x8xbf16, #tpu.memory_space<vmem>>, vector<16x8xbf16>
    %c0_1 = arith.constant 0 : index
    %c0_2 = arith.constant 0 : index
    %1 = vector.load %arg2[%c0_1, %c0_2] : memref<8x128xbf16, #tpu.memory_space<vmem>>, vector<8x128xbf16>
    %cst = arith.constant dense<0.000000e+00> : vector<16x128xf32>
    %2 = tpu.matmul %0, %1, %cst {dimension_numbers = #tpu.dot_dimension_numbers<[1], [0], [0], [1], [0, 0, 1, 1], [], []>} : vector<16x8xbf16>, vector<8x128xbf16>, vector<16x128xf32> -> vector<16x128xf32>
    %c0_3 = arith.constant 0 : index
    %c0_4 = arith.constant 0 : index
    %c0_5 = arith.constant 0 : index
    %3 = vector.load %arg4[%c0_3, %c0_4, %c0_5] : memref<3x1x128xf32, #tpu.memory_space<vmem>>, vector<1x1x128xf32>
    %4 = vector.shape_cast %3 : vector<1x1x128xf32> to vector<1x128xf32>
    %5 = vector.broadcast %4 : vector<1x128xf32> to vector<16x128xf32>
    %6 = arith.addf %2, %5 : vector<16x128xf32>
    %cst_6 = arith.constant 0.000000e+00 : f32
    %7 = vector.broadcast %cst_6 : f32 to vector<16x128xf32>
    %8 = arith.maximumf %6, %7 : vector<16x128xf32>
    %9 = arith.truncf %8 : vector<16x128xf32> to vector<16x128xbf16>
    %c0_7 = arith.constant 0 : index
    %c0_8 = arith.constant 0 : index
    %c0_9 = arith.constant 0 : index
    %10 = vector.load %arg3[%c0_7, %c0_8, %c0_9] : memref<2x128x128xbf16, #tpu.memory_space<vmem>>, vector<1x128x128xbf16>
    %11 = vector.shape_cast %10 : vector<1x128x128xbf16> to vector<128x128xbf16>
    %cst_10 = arith.constant dense<0.000000e+00> : vector<16x128xf32>
    %12 = tpu.matmul %9, %11, %cst_10 {dimension_numbers = #tpu.dot_dimension_numbers<[1], [0], [0], [1], [0, 0, 1, 1], [], []>} : vector<16x128xbf16>, vector<128x128xbf16>, vector<16x128xf32> -> vector<16x128xf32>
    %c1 = arith.constant 1 : index
    %c0_11 = arith.constant 0 : index
    %c0_12 = arith.constant 0 : index
    %13 = vector.load %arg4[%c1, %c0_11, %c0_12] : memref<3x1x128xf32, #tpu.memory_space<vmem>>, vector<1x1x128xf32>
    %14 = vector.shape_cast %13 : vector<1x1x128xf32> to vector<1x128xf32>
    %15 = vector.broadcast %14 : vector<1x128xf32> to vector<16x128xf32>
    %16 = arith.addf %12, %15 : vector<16x128xf32>
    %cst_13 = arith.constant 0.000000e+00 : f32
    %17 = vector.broadcast %cst_13 : f32 to vector<16x128xf32>
    %18 = arith.maximumf %16, %17 : vector<16x128xf32>
    %19 = arith.truncf %18 : vector<16x128xf32> to vector<16x128xbf16>
    %c1_14 = arith.constant 1 : index
    %c0_15 = arith.constant 0 : index
    %c0_16 = arith.constant 0 : index
    %20 = vector.load %arg3[%c1_14, %c0_15, %c0_16] : memref<2x128x128xbf16, #tpu.memory_space<vmem>>, vector<1x128x128xbf16>
    %21 = vector.shape_cast %20 : vector<1x128x128xbf16> to vector<128x128xbf16>
    %cst_17 = arith.constant dense<0.000000e+00> : vector<16x128xf32>
    %22 = tpu.matmul %19, %21, %cst_17 {dimension_numbers = #tpu.dot_dimension_numbers<[1], [0], [0], [1], [0, 0, 1, 1], [], []>} : vector<16x128xbf16>, vector<128x128xbf16>, vector<16x128xf32> -> vector<16x128xf32>
    %c2 = arith.constant 2 : index
    %c0_18 = arith.constant 0 : index
    %c0_19 = arith.constant 0 : index
    %23 = vector.load %arg4[%c2, %c0_18, %c0_19] : memref<3x1x128xf32, #tpu.memory_space<vmem>>, vector<1x1x128xf32>
    %24 = vector.shape_cast %23 : vector<1x1x128xf32> to vector<1x128xf32>
    %25 = vector.broadcast %24 : vector<1x128xf32> to vector<16x128xf32>
    %26 = arith.addf %22, %25 : vector<16x128xf32>
    %c0_20 = arith.constant 0 : index
    %c0_21 = arith.constant 0 : index
    %27 = vector.load %arg5[%c0_20, %c0_21] : memref<16x128xf32, #tpu.memory_space<vmem>>, vector<16x128xf32>
    tpu.vector_store %arg5[%c0_20, %c0_21], %26 {strides = array<i32>} : memref<16x128xf32, #tpu.memory_space<vmem>>, vector<16x128xf32>,
    return
  }
  func.func @transform_0(%arg0: i32) -> (i32, i32) {
    %c0_i32 = arith.constant 0 : i32
    %c0_i32_0 = arith.constant 0 : i32
    return %arg0, %c0_i32 : i32, i32
  }
  func.func @transform_1(%arg0: i32) -> (i32, i32) {
    %c0_i32 = arith.constant 0 : i32
    %c0_i32_0 = arith.constant 0 : i32
    %c0_i32_1 = arith.constant 0 : i32
    return %c0_i32, %c0_i32_0 : i32, i32
  }
  func.func @transform_2(%arg0: i32) -> (i32, i32, i32) {
    %c0_i32 = arith.constant 0 : i32
    %c0_i32_0 = arith.constant 0 : i32
    %c0_i32_1 = arith.constant 0 : i32
    %c0_i32_2 = arith.constant 0 : i32
    return %c0_i32, %c0_i32_0, %c0_i32_1 : i32, i32, i32
  }
  func.func @transform_3(%arg0: i32) -> (i32, i32, i32) {
    %c0_i32 = arith.constant 0 : i32
    %c0_i32_0 = arith.constant 0 : i32
    %c0_i32_1 = arith.constant 0 : i32
    %c0_i32_2 = arith.constant 0 : i32
    return %c0_i32, %c0_i32_0, %c0_i32_1 : i32, i32, i32
  }
  func.func @transform_4(%arg0: i32) -> (i32, i32) {
    %c0_i32 = arith.constant 0 : i32
    %c0_i32_0 = arith.constant 0 : i32
    return %arg0, %c0_i32 : i32, i32
  }
}

</mosaic_0001>

<bundles_post_ra>
// kernel: forward.1
= control target key start
LH: loop header
LB: loop body
LE: loop exit
PB: predicated region body
PF: predicated region fallthrough
CT: control target
= control target key end

     0   :  { %9 = vsyncpa [#allocation3], 0  ;;  %s471_s15 = smov [#allocation2]   ;;  %s557_s0 = inlined_call_operand.vmem [shape: bf16[16,8], index: 0, kind: input, shape index: {}]   ;;  %s558_s1 = inlined_call_operand.vmem [shape: bf16[8,128], index: 1, kind: input, shape index: {}]   ;;  %s559_s2 = inlined_call_operand.hbm [shape: bf16[2,128,128], index: 2, kind: input, shape index: {}]   ;;  %s560_s3 = inlined_call_operand.vmem [shape: f32[3,1,128], index: 3, kind: input, shape index: {}]   ;;  %s561_s4 = inlined_call_operand.vmem [shape: f32[16,128], index: 4, kind: output, shape index: {}]  }
   0x1   :  { %s19_s16 = sshll.u32 %s471_s15, 4  ;;  %s447_s19 = scalar_lea.hbm %s559_s2, 2048  ;;  %s20_s16 = int_to_ptr.vmem [resolvable:$true] %s19_s16 }
   0x2   :  { %p448_p0 = scmp.ne.s32.totalorder %s559_s2, %s447_s19  ;;  %p451_p1 = scmp.lt.u32.totalorder %s447_s19, %s559_s2 }
   0x4   :  { %p453_p2 = pnand %p451_p1, %p448_p0 }
   0x6   :  { %456 = shalt.err (!%p453_p2)
}
   0x7   :  { %s457_s24 = scalar_lea.vmem %s20_s16, 2048  ;;  %p462_p4 = scmp.lt.s32.totalorder %s20_s16, %s20_s16 }
   0x8   :  { %p458_p3 = scmp.ne.s32.totalorder %s20_s16, %s457_s24  ;;  %p463_p5 = scmp.lt.s32.totalorder %s457_s24, %s457_s24 }
   0xa   :  { %p464_p6 = por %p463_p5, %p462_p4 }
   0xc   :  { %p465_p7 = pnand %p464_p6, %p458_p3 }
   0xe   :  { %468 = shalt.err (!%p465_p7)
}
   0xf   :  { %s472_s25 = smov 64   ;;  %s473_s26 = smov 4  }
  0x10   :  { %25 = dma.hbm_to_vmem [thread:$0]  %s559_s2, 2048, %s20_s16, [#allocation3], %s472_s25, %s472_s25, %s473_s26  }
  0x11   :  { %469 = dma.done.wait [#allocation3], 2048  }
  0x12   :  { %470 = vsyncadd [#allocation3], 4294965248  ;;  %v474_v0 = vmov 0.0   ;;  %vm475_vm0 = vmmov 0   ;;  %vm51_vm1 = vcmask 1043456   ;;  %v430_v3 = vld [vmem:[%s557_s0] sm:$0xff]  }
  0x13   :  { %379 = vmatprep.subr.bf16.mxu0 %v474_v0  ;;  %381 = vmatprep.mubr.msk.bf16.mxu0 %vm475_vm0, %v474_v0  ;;  %v34_v1 = vld [vmem:[%s558_s1] sm:$0xf]  ;;  %vm47_vm2 = vcmask 64512   ;;  %v432_v5 = vld [vmem:[#allocation2 + $0x8] sm:$0xff]   ;;  %v433_v6 = vld [vmem:[#allocation2 + $0x10] sm:$0xff]  }
  0x14   :  { %385 = vmatprep.subr.bf16.mxu1 %v474_v0  ;;  %401 = vmatprep.mubr.msk.bf16.mxu1 %vm475_vm0, %v474_v0  ;;  %v53_v2 = vsel %vm51_vm1, %v34_v1, 0  ;;  %v431_v4 = vld [vmem:[#allocation2] sm:$0xff]   ;;  %v434_v7 = vld [vmem:[#allocation2 + $0x18] sm:$0xff]   ;;  %v436_v9 = vld [vmem:[#allocation2 + $0x28] sm:$0xff]  }
  0x15   :  { %380 = vmatpush3.bf16.msra.mxu0 %v53_v2  ;;  %386 = vmatpush3.bf16.msra.mxu1 %v431_v4  ;;  %v435_v8 = vld [vmem:[#allocation2 + $0x20] sm:$0xff]   ;;  %v437_v10 = vld [vmem:[#allocation2 + $0x30] sm:$0xff]   ;;  %v438_v11 = vld [vmem:[#allocation2 + $0x38] sm:$0xff]  }
  0x16   :  { %405 = vmatprep.subr.bf16.mxu0 %v474_v0  ;;  %387 = vmatprep.subr.bf16.mxu1 %v474_v0  ;;  %v439_v12 = vld [vmem:[#allocation2 + $0x40] sm:$0xff]   ;;  %v440_v13 = vld [vmem:[#allocation2 + $0x48] sm:$0xff]   ;;  %v441_v14 = vld [vmem:[#allocation2 + $0x50] sm:$0xff]  }
  0x17   :  { %v442_v15 = vld [vmem:[#allocation2 + $0x58] sm:$0xff]   ;;  %v443_v16 = vld [vmem:[#allocation2 + $0x60] sm:$0xff]   ;;  %v444_v17 = vld [vmem:[#allocation2 + $0x68] sm:$0xff]  }
  0x18   :  { %382 = vmatmul.mubr.msk.bf16.vlgmr.msra.gmra.mrb[0].mxu0 %vm47_vm2, %v430_v3  ;;  %v336_v18 = vld [vmem:[%s560_s3] ss:$0 sm:$0xff]  ;;  %v445_v28 = vld [vmem:[#allocation2 + $0x70] sm:$0xff]   ;;  %v446_v29 = vld [vmem:[#allocation2 + $0x78] sm:$0xff]  }
  0x19   :  { %421 = vmatprep.mubr.msk.bf16.mxu0 %vm475_vm0, %v474_v0  ;;  %388 = vmatpush3.bf16.msra.mxu1 %v432_v5  ;;  %v340_v30 = vld [vmem:[%s560_s3 + $0x1] ss:$0 sm:$0xff]  ;;  %v350_v40 = vld [vmem:[%s560_s3 + $0x2] ss:$0 sm:$0xff] }
  0x1a   :  { %389 = vmatprep.subr.bf16.mxu1 %v474_v0  ;;  %406 = vmatpush3.bf16.msra.mxu0 %v439_v12 }
  0x1b   :  { %407 = vmatprep.subr.bf16.mxu0 %v474_v0 }
  0x1d   :  { %390 = vmatpush3.bf16.msra.mxu1 %v433_v6 }
  0x1e   :  { %391 = vmatprep.subr.bf16.mxu1 %v474_v0  ;;  %408 = vmatpush3.bf16.msra.mxu0 %v440_v13 }
  0x1f   :  { %409 = vmatprep.subr.bf16.mxu0 %v474_v0 }
  0x21   :  { %392 = vmatpush3.bf16.msra.mxu1 %v434_v7 }
  0x22   :  { %393 = vmatprep.subr.bf16.mxu1 %v474_v0  ;;  %410 = vmatpush3.bf16.msra.mxu0 %v441_v14 }
  0x23   :  { %411 = vmatprep.subr.bf16.mxu0 %v474_v0 }
  0x25   :  { %394 = vmatpush3.bf16.msra.mxu1 %v435_v8 }
  0x26   :  { %395 = vmatprep.subr.bf16.mxu1 %v474_v0  ;;  %412 = vmatpush3.bf16.msra.mxu0 %v442_v15 }
  0x27   :  { %413 = vmatprep.subr.bf16.mxu0 %v474_v0 }
  0x29   :  { %396 = vmatpush3.bf16.msra.mxu1 %v436_v9 }
  0x2a   :  { %397 = vmatprep.subr.bf16.mxu1 %v474_v0  ;;  %414 = vmatpush3.bf16.msra.mxu0 %v443_v16 }
  0x2b   :  { %415 = vmatprep.subr.bf16.mxu0 %v474_v0 }
  0x2d   :  { %398 = vmatpush3.bf16.msra.mxu1 %v437_v10 }
  0x2e   :  { %399 = vmatprep.subr.bf16.mxu1 %v474_v0  ;;  %416 = vmatpush3.bf16.msra.mxu0 %v444_v17 }
  0x2f   :  { %417 = vmatprep.subr.bf16.mxu0 %v474_v0 }
  0x31   :  { %400 = vmatpush3.bf16.msra.mxu1 %v438_v11 }
  0x32   :  { %418 = vmatpush3.bf16.msra.mxu0 %v445_v28 }
  0x33   :  { %419 = vmatprep.subr.bf16.mxu0 %v474_v0 }
  0x36   :  { %420 = vmatpush3.bf16.msra.mxu0 %v446_v29 }
  0xeb   :  { %v89_v19 = vpop.f32.mrb[0].mxu0 }
  0xec   :  { %v90_v20 = vadd.f32 %v336_v18, %v89_v19  ;;  %v383_v21 = vpop.f32.mrb[1].mxu0 }
  0xed   :  { %v92_v22 = vpop.f32.mrb[2].mxu0 }
  0xee   :  { %v93_v23 = vadd.f32 %v336_v18, %v92_v22  ;;  %v384_v24 = vpop.f32.mrb[3].mxu0  ;;  %v96_v25 = vmax.f32 %v90_v20, 0.0 }
  0xf0   :  { %v97_v26 = vmax.f32 %v93_v23, 0.0 }
  0xf2   :  { %v98_v27 = vpack.c.bf16 %v97_v26, %v96_v25 }
  0xf4   :  { %402 = vmatmul.mubr.bf16.vlgmr.msra.gmra.mrb[0].mxu1 %v98_v27 }
 0x1c7   :  { %v205_v31 = vpop.f32.mrb[0].mxu1 }
 0x1c8   :  { %v206_v32 = vadd.f32 %v340_v30, %v205_v31  ;;  %v403_v33 = vpop.f32.mrb[1].mxu1 }
 0x1c9   :  { %v208_v34 = vpop.f32.mrb[2].mxu1 }
 0x1ca   :  { %v209_v35 = vadd.f32 %v340_v30, %v208_v34  ;;  %v404_v36 = vpop.f32.mrb[3].mxu1  ;;  %v212_v37 = vmax.f32 %v206_v32, 0.0 }
 0x1cc   :  { %v213_v38 = vmax.f32 %v209_v35, 0.0 }
 0x1ce   :  { %v214_v39 = vpack.c.bf16 %v213_v38, %v212_v37 }
 0x1d0   :  { %422 = vmatmul.mubr.bf16.vlgmr.msra.gmra.mrb[4].mxu0 %v214_v39 }
 0x2a3   :  { %v322_v41 = vpop.f32.mrb[4].mxu0 }
 0x2a4   :  { %v323_v42 = vadd.f32 %v350_v40, %v322_v41  ;;  %v423_v43 = vpop.f32.mrb[5].mxu0 }
 0x2a5   :  { %v325_v44 = vpop.f32.mrb[6].mxu0 }
 0x2a6   :  { %329 = vst [vmem:[%s561_s4] sm:$0xff] %v323_v42  ;;  %v326_v45 = vadd.f32 %v350_v40, %v325_v44  ;;  %v424_v46 = vpop.f32.mrb[7].mxu0 }
 0x2a8   :  { %330 = vst [vmem:[%s561_s4 + $0x8] sm:$0xff] %v326_v45 }
 0x2a9   :  { %335 = vsyncpa [#allocation3], 1 }

</bundles_post_ra>
